<compile_context>
chip_gen: v5e
topology: v5e:2x2
jax: 0.10.0
libtpu: 0.0.40
codegen_flags: <defaults>
</compile_context>

<pallas_src>
import functools

import jax
import jax.numpy as jnp
from jax import lax
from jax.experimental import pallas as pl
from jax.experimental.pallas import tpu as pltpu

_LN_EPS = 1e-5  # PyTorch nn.LayerNorm default eps


def _round_up(x, m):
    return ((x + m - 1) // m) * m


def _fc_block_kernel(x_ref, w_ref, b_ref, g_ref, beta_ref, o_ref, acc_ref,
                     *, use_tanh):
    # x_ref:    (TM, TK)  input row/K tile (cast to bf16 for the MXU)
    # w_ref:    (TK, N)   bf16 weight K-slice, pre-transposed to (in, out)
    # b_ref:    (1, N)    f32 bias
    # g_ref:    (1, N)    f32 LayerNorm weight (gamma)
    # beta_ref: (1, N)    f32 LayerNorm bias (beta)
    # o_ref:    (TM, N)   output tile
    # acc_ref:  (TM, N)   f32 accumulator, persists across the K grid axis
    k = pl.program_id(1)

    @pl.when(k == 0)
    def _():
        acc_ref[...] = jnp.zeros_like(acc_ref)

    acc_ref[...] += jnp.dot(
        x_ref[...].astype(jnp.bfloat16), w_ref[...],
        preferred_element_type=jnp.float32)

    @pl.when(k == pl.num_programs(1) - 1)
    def _():
        h = acc_ref[...] + b_ref[...]                    # f32 (TM, N)
        mean = jnp.mean(h, axis=-1, keepdims=True)
        hc = h - mean
        var = jnp.mean(hc * hc, axis=-1, keepdims=True)
        y = hc * lax.rsqrt(var + _LN_EPS) * g_ref[...] + beta_ref[...]
        if use_tanh:
            y = jnp.tanh(y)
        else:
            y = jnp.maximum(y, 0.0)                      # F.relu_
        o_ref[...] = y.astype(o_ref.dtype)


def prepare_fc_block_params(w, b, gamma, beta):
    """One-time param prep (keep OUT of the per-call path): transpose the
    PyTorch-layout (out, in) weight to (in, out) and cast to bf16 for the MXU;
    reshape the tiny per-feature vectors to f32 (1, N) rows."""
    return (jnp.asarray(w.T, dtype=jnp.bfloat16),
            jnp.asarray(b, jnp.float32).reshape(1, -1),
            jnp.asarray(gamma, jnp.float32).reshape(1, -1),
            jnp.asarray(beta, jnp.float32).reshape(1, -1))


def fc_block_forward(x, w_t, b2, g2, beta2, *, use_tanh=False,
                     tile_m=256, block_k=512):
    """x: (..., in_features); w_t: (in_features, out_features) bf16;
       b2/g2/beta2: (1, out_features) f32."""
    K, N = w_t.shape
    assert x.shape[-1] == K
    lead = x.shape[:-1]
    x2d = x.reshape(-1, K)
    M = x2d.shape[0]

    # Row tile: large (MXU-friendly) but never bigger than needed for small M;
    # always a multiple of 8 sublanes. Ragged edges handled by zero padding.
    tm = min(tile_m, _round_up(max(M, 1), 8))
    m_pad = _round_up(M, tm)

    # Reduction (in_features) tile: full K when small, else 512-wide slices.
    tk = block_k if K > block_k else K
    k_pad = _round_up(K, tk)

    if m_pad != M or k_pad != K:
        x2d = jnp.pad(x2d, ((0, m_pad - M), (0, k_pad - K)))
    if k_pad != K:
        w_t = jnp.pad(w_t, ((0, k_pad - K), (0, 0)))

    grid = (m_pad // tm, k_pad // tk)
    kernel = functools.partial(_fc_block_kernel, use_tanh=use_tanh)

    out = pl.pallas_call(
        kernel,
        out_shape=jax.ShapeDtypeStruct((m_pad, N), x.dtype),
        grid_spec=pltpu.PrefetchScalarGridSpec(
            num_scalar_prefetch=0,
            grid=grid,
            in_specs=[
                pl.BlockSpec((tm, tk), lambda i, k: (i, k)),   # x row/K tile
                pl.BlockSpec((tk, N), lambda i, k: (k, 0)),    # W^T K-slice
                pl.BlockSpec((1, N), lambda i, k: (0, 0)),     # bias
                pl.BlockSpec((1, N), lambda i, k: (0, 0)),     # LN gamma
                pl.BlockSpec((1, N), lambda i, k: (0, 0)),     # LN beta
            ],
            out_specs=pl.BlockSpec((tm, N), lambda i, k: (i, 0)),
            scratch_shapes=[pltpu.VMEM((tm, N), jnp.float32)],
        ),
        compiler_params=pltpu.CompilerParams(
            dimension_semantics=("parallel", "arbitrary"),
            vmem_limit_bytes=48 * 1024 * 1024,
        ),
    )(x2d, w_t, b2, g2, beta2)

    out = out[:M]
    return out.reshape(*lead, N)


if __name__ == "__main__":
    # Small shapes consistent with FC_block usage: (batch, seq, in_features).
    batch, seq, in_features, out_features = 2, 8, 32, 64

    key = jax.random.PRNGKey(0)
    kx, kw, kb = jax.random.split(key, 3)

    x = jax.random.normal(kx, (batch, seq, in_features), jnp.float32)

    # nn.Linear default init (uniform +-1/sqrt(fan_in)); LayerNorm default affine.
    bound = 1.0 / (in_features ** 0.5)
    w = jax.random.uniform(kw, (out_features, in_features), jnp.float32,
                           minval=-bound, maxval=bound)
    b = jax.random.uniform(kb, (out_features,), jnp.float32,
                           minval=-bound, maxval=bound)
    gamma = jnp.ones((out_features,), jnp.float32)
    beta = jnp.zeros((out_features,), jnp.float32)

    params = prepare_fc_block_params(w, b, gamma, beta)

    out_relu = jax.block_until_ready(fc_block_forward(x, *params, use_tanh=False))
    out_tanh = jax.block_until_ready(fc_block_forward(x, *params, use_tanh=True))

    # Pure-JAX f32 reference matching the PyTorch forward.
    h = x @ w.T + b
    mean = h.mean(-1, keepdims=True)
    var = ((h - mean) ** 2).mean(-1, keepdims=True)
    ln = (h - mean) / jnp.sqrt(var + _LN_EPS) * gamma + beta
    ref_relu = jnp.maximum(ln, 0.0)
    ref_tanh = jnp.tanh(ln)

    assert out_relu.shape == (batch, seq, out_features)
    # bf16 MXU inputs vs f32 reference -> slightly loosened tolerance.
    assert jnp.allclose(out_relu, ref_relu, atol=3e-2, rtol=3e-2), "relu path mismatch"
    assert jnp.allclose(out_tanh, ref_tanh, atol=3e-2, rtol=3e-2), "tanh path mismatch"

    print("KERNEL_OK")
</pallas_src>

<mosaic_0001>
module attributes {stable_mosaic.version = 11 : i64} {
  func.func @_fc_block_kernel(%arg0: i32, %arg1: i32, %arg2: memref<16x32xf32, #tpu.memory_space<vmem>>, %arg3: memref<32x64xbf16, #tpu.memory_space<vmem>>, %arg4: memref<1x64xf32, #tpu.memory_space<vmem>>, %arg5: memref<1x64xf32, #tpu.memory_space<vmem>>, %arg6: memref<1x64xf32, #tpu.memory_space<vmem>>, %arg7: memref<16x64xf32, #tpu.memory_space<vmem>>, %arg8: memref<16x64xf32, #tpu.memory_space<vmem>>) attributes {dimension_semantics = [#tpu.dimension_semantics<parallel>, #tpu.dimension_semantics<arbitrary>], iteration_bounds = array<i64: 1, 1>, scalar_prefetch = 0 : i64, scratch_operands = 1 : i64, tpu.core_type = #tpu.core_type<tc>, window_params = [{transform_indices = @transform_0, window_bounds = array<i64: 16, 32>}, {transform_indices = @transform_1, window_bounds = array<i64: 32, 64>}, {pipeline_mode = #tpu.pipeline_mode<synchronous>, transform_indices = @transform_2, window_bounds = array<i64: 1, 64>}, {pipeline_mode = #tpu.pipeline_mode<synchronous>, transform_indices = @transform_3, window_bounds = array<i64: 1, 64>}, {pipeline_mode = #tpu.pipeline_mode<synchronous>, transform_indices = @transform_4, window_bounds = array<i64: 1, 64>}, {transform_indices = @transform_5, window_bounds = array<i64: 16, 64>}]} {
    %c0_i32 = arith.constant 0 : i32
    %0 = arith.cmpi eq, %arg1, %c0_i32 : i32
    %1 = arith.extui %0 : i1 to i32
    %c0_i32_0 = arith.constant 0 : i32
    %2 = arith.cmpi ne, %1, %c0_i32_0 : i32
    scf.if %2 {
      %cst_10 = arith.constant 0.000000e+00 : f32
      %13 = vector.broadcast %cst_10 : f32 to vector<16x64xf32>
      %c0_11 = arith.constant 0 : index
      %c0_12 = arith.constant 0 : index
      %14 = vector.load %arg8[%c0_11, %c0_12] : memref<16x64xf32, #tpu.memory_space<vmem>>, vector<16x64xf32>
      tpu.vector_store %arg8[%c0_11, %c0_12], %13 {strides = array<i32>} : memref<16x64xf32, #tpu.memory_space<vmem>>, vector<16x64xf32>,
    } else {
    }
    %c0 = arith.constant 0 : index
    %c0_1 = arith.constant 0 : index
    %3 = vector.load %arg8[%c0, %c0_1] : memref<16x64xf32, #tpu.memory_space<vmem>>, vector<16x64xf32>
    %c0_2 = arith.constant 0 : index
    %c0_3 = arith.constant 0 : index
    %4 = vector.load %arg2[%c0_2, %c0_3] : memref<16x32xf32, #tpu.memory_space<vmem>>, vector<16x32xf32>
    %5 = arith.truncf %4 : vector<16x32xf32> to vector<16x32xbf16>
    %c0_4 = arith.constant 0 : index
    %c0_5 = arith.constant 0 : index
    %6 = vector.load %arg3[%c0_4, %c0_5] : memref<32x64xbf16, #tpu.memory_space<vmem>>, vector<32x64xbf16>
    %cst = arith.constant dense<0.000000e+00> : vector<16x64xf32>
    %7 = tpu.matmul %5, %6, %cst {dimension_numbers = #tpu.dot_dimension_numbers<[1], [0], [0], [1], [0, 0, 1, 1], [], []>} : vector<16x32xbf16>, vector<32x64xbf16>, vector<16x64xf32> -> vector<16x64xf32>
    %8 = arith.addf %3, %7 : vector<16x64xf32>
    %c0_6 = arith.constant 0 : index
    %c0_7 = arith.constant 0 : index
    %9 = vector.load %arg8[%c0_6, %c0_7] : memref<16x64xf32, #tpu.memory_space<vmem>>, vector<16x64xf32>
    tpu.vector_store %arg8[%c0_6, %c0_7], %8 {strides = array<i32>} : memref<16x64xf32, #tpu.memory_space<vmem>>, vector<16x64xf32>,
    %c0_i32_8 = arith.constant 0 : i32
    %10 = arith.cmpi eq, %arg1, %c0_i32_8 : i32
    %11 = arith.extui %10 : i1 to i32
    %c0_i32_9 = arith.constant 0 : i32
    %12 = arith.cmpi ne, %11, %c0_i32_9 : i32
    scf.if %12 {
      %c0_10 = arith.constant 0 : index
      %c0_11 = arith.constant 0 : index
      %13 = vector.load %arg8[%c0_10, %c0_11] : memref<16x64xf32, #tpu.memory_space<vmem>>, vector<16x64xf32>
      %c0_12 = arith.constant 0 : index
      %c0_13 = arith.constant 0 : index
      %14 = vector.load %arg4[%c0_12, %c0_13] : memref<1x64xf32, #tpu.memory_space<vmem>>, vector<1x64xf32>
      %15 = vector.broadcast %14 : vector<1x64xf32> to vector<16x64xf32>
      %16 = arith.addf %13, %15 : vector<16x64xf32>
      %cst_14 = arith.constant dense<0.000000e+00> : vector<16xf32>
      %17 = vector.multi_reduction <add>, %16, %cst_14 [1] : vector<16x64xf32> to vector<16xf32>
      %18 = vector.shape_cast %17 : vector<16xf32> to vector<16x1xf32>
      %cst_15 = arith.constant 6.400000e+01 : f32
      %19 = vector.broadcast %cst_15 : f32 to vector<16x1xf32>
      %20 = arith.divf %18, %19 : vector<16x1xf32>
      %21 = vector.broadcast %20 : vector<16x1xf32> to vector<16x64xf32>
      %22 = arith.subf %16, %21 : vector<16x64xf32>
      %23 = arith.mulf %22, %22 : vector<16x64xf32>
      %cst_16 = arith.constant dense<0.000000e+00> : vector<16xf32>
      %24 = vector.multi_reduction <add>, %23, %cst_16 [1] : vector<16x64xf32> to vector<16xf32>
      %25 = vector.shape_cast %24 : vector<16xf32> to vector<16x1xf32>
      %cst_17 = arith.constant 6.400000e+01 : f32
      %26 = vector.broadcast %cst_17 : f32 to vector<16x1xf32>
      %27 = arith.divf %25, %26 : vector<16x1xf32>
      %cst_18 = arith.constant 9.99999974E-6 : f32
      %28 = vector.broadcast %cst_18 : f32 to vector<16x1xf32>
      %29 = arith.addf %27, %28 : vector<16x1xf32>
      %30 = math.rsqrt %29 : vector<16x1xf32>
      %31 = vector.broadcast %30 : vector<16x1xf32> to vector<16x64xf32>
      %32 = arith.mulf %22, %31 : vector<16x64xf32>
      %c0_19 = arith.constant 0 : index
      %c0_20 = arith.constant 0 : index
      %33 = vector.load %arg5[%c0_19, %c0_20] : memref<1x64xf32, #tpu.memory_space<vmem>>, vector<1x64xf32>
      %34 = vector.broadcast %33 : vector<1x64xf32> to vector<16x64xf32>
      %35 = arith.mulf %32, %34 : vector<16x64xf32>
      %c0_21 = arith.constant 0 : index
      %c0_22 = arith.constant 0 : index
      %36 = vector.load %arg6[%c0_21, %c0_22] : memref<1x64xf32, #tpu.memory_space<vmem>>, vector<1x64xf32>
      %37 = vector.broadcast %36 : vector<1x64xf32> to vector<16x64xf32>
      %38 = arith.addf %35, %37 : vector<16x64xf32>
      %cst_23 = arith.constant 0.000000e+00 : f32
      %39 = vector.broadcast %cst_23 : f32 to vector<16x64xf32>
      %40 = arith.maximumf %38, %39 : vector<16x64xf32>
      %c0_24 = arith.constant 0 : index
      %c0_25 = arith.constant 0 : index
      %41 = vector.load %arg7[%c0_24, %c0_25] : memref<16x64xf32, #tpu.memory_space<vmem>>, vector<16x64xf32>
      tpu.vector_store %arg7[%c0_24, %c0_25], %40 {strides = array<i32>} : memref<16x64xf32, #tpu.memory_space<vmem>>, vector<16x64xf32>,
    } else {
    }
    return
  }
  func.func @transform_0(%arg0: i32, %arg1: i32) -> (i32, i32) {
    %c0_i32 = arith.constant 0 : i32
    return %arg0, %arg1 : i32, i32
  }
  func.func @transform_1(%arg0: i32, %arg1: i32) -> (i32, i32) {
    %c0_i32 = arith.constant 0 : i32
    %c0_i32_0 = arith.constant 0 : i32
    return %arg1, %c0_i32 : i32, i32
  }
  func.func @transform_2(%arg0: i32, %arg1: i32) -> (i32, i32) {
    %c0_i32 = arith.constant 0 : i32
    %c0_i32_0 = arith.constant 0 : i32
    %c0_i32_1 = arith.constant 0 : i32
    return %c0_i32, %c0_i32_0 : i32, i32
  }
  func.func @transform_3(%arg0: i32, %arg1: i32) -> (i32, i32) {
    %c0_i32 = arith.constant 0 : i32
    %c0_i32_0 = arith.constant 0 : i32
    %c0_i32_1 = arith.constant 0 : i32
    return %c0_i32, %c0_i32_0 : i32, i32
  }
  func.func @transform_4(%arg0: i32, %arg1: i32) -> (i32, i32) {
    %c0_i32 = arith.constant 0 : i32
    %c0_i32_0 = arith.constant 0 : i32
    %c0_i32_1 = arith.constant 0 : i32
    return %c0_i32, %c0_i32_0 : i32, i32
  }
  func.func @transform_5(%arg0: i32, %arg1: i32) -> (i32, i32) {
    %c0_i32 = arith.constant 0 : i32
    %c0_i32_0 = arith.constant 0 : i32
    return %arg0, %c0_i32 : i32, i32
  }
}

</mosaic_0001>

<bundles_post_ra>
// kernel: tpu_custom_call.1
= control target key start
LH: loop header
LB: loop body
LE: loop exit
PB: predicated region body
PF: predicated region fallthrough
CT: control target
= control target key end

     0   :  { %10 = vsyncpa [#allocation4], 0  ;;  %s383_s0 = inlined_call_operand.hbm [shape: f32[16,32], index: 0, kind: input, shape index: {}]   ;;  %s384_s1 = inlined_call_operand.hbm [shape: bf16[32,64], index: 1, kind: input, shape index: {}]   ;;  %s385_s2 = inlined_call_operand.vmem [shape: f32[1,64], index: 2, kind: input, shape index: {}]   ;;  %s386_s3 = inlined_call_operand.vmem [shape: f32[1,64], index: 3, kind: input, shape index: {}]   ;;  %s387_s4 = inlined_call_operand.vmem [shape: f32[1,64], index: 4, kind: input, shape index: {}]   ;;  %s388_s5 = inlined_call_operand.hbm [shape: f32[16,64], index: 5, kind: output, shape index: {}]  }
   0x1   :  { %11 = vsyncpa [#allocation7], 0 }
   0x2   :  { %12 = vsyncpa [#allocation5], 0  ;;  %s17_s20 = sshll.u32 %s383_s0, 4  ;;  %s310_s21 = smov [#allocation3]   ;;  %s18_s20 = int_to_ptr.hbm [resolvable:$true] %s17_s20 }
   0x3   :  { %s19_s22 = sshll.u32 %s310_s21, 4  ;;  %s30_s25 = sshll.u32 %s384_s1, 4  ;;  %s20_s22 = int_to_ptr.vmem [resolvable:$true] %s19_s22  ;;  %s31_s25 = int_to_ptr.hbm [resolvable:$true] %s30_s25 }
   0x4   :  { %s311_s26 = smov 128   ;;  %s312_s27 = smov 8  }
   0x5   :  { %25 = dma.hbm_to_vmem [thread:$0]  %s18_s20, 256, %s20_s22, [#allocation4], %s311_s26, %s311_s26, %s312_s27  }
   0x6   :  { %s313_s28 = smov [#allocation6]   ;;  %s314_s30 = smov 64  }
   0x7   :  { %s32_s29 = sshll.u32 %s313_s28, 4  ;;  %s315_s0 = smov 4   ;;  %s33_s29 = int_to_ptr.vmem [resolvable:$true] %s32_s29 }
   0x8   :  { %38 = dma.hbm_to_vmem [thread:$0]  %s31_s25, 256, %s33_s29, [#allocation7], %s314_s30, %s314_s30, %s315_s0  }
   0x9   :  { %304 = dma.done.wait [#allocation4], 256  }
   0xa   :  { %305 = vsyncadd [#allocation4], 4294967040 }
   0xb   :  { %306 = dma.done.wait [#allocation7], 256  }
   0xc   :  { %307 = vsyncadd [#allocation7], 4294967040  ;;  %vm58_vm0 = vcmask 523264   ;;  %v316_v0 = vmov 0.0   ;;  %v213_v1 = vld [vmem:[#allocation6 + $0x8] sm:$0xff]  ;;  %v212_v2 = vld [vmem:[#allocation6] sm:$0xff] }
   0xd   :  { %59 = vst.msk [vmem:[#allocation2] sm:$0xff] %vm58_vm0, %v316_v0  ;;  %v63_v3 = vld [vmem:[#allocation3] sm:$0xff]  ;;  %92 = vmatpush.bf16.msra.mxu0 %v213_v1  ;;  %v64_v4 = vld [vmem:[#allocation3 + $0x8] sm:$0xff]  ;;  %vm82_vm1 = vcmask 261120   ;;  %v223_v10 = vld [vmem:[%s385_s2] ss:$0 sm:$0xff] }
   0xe   :  { %60 = vst.msk [vmem:[#allocation2 + $0x8] sm:$0xff] %vm58_vm0, %v316_v0  ;;  %v65_v5 = vpack.c.bf16 %v64_v4, %v63_v3  ;;  %v317_v19 = vmov 64.0   ;;  %v224_v50 = vld [vmem:[%s386_s3] ss:$0 sm:$0xff]  ;;  %s318_s3 = smov [#allocation8]  }
   0xf   :  { %226 = vrcp.f32 %v317_v19  ;;  %v225_v54 = vld [vmem:[%s387_s4] ss:$0 sm:$0xff]  ;;  %s187_s10 = sshll.u32 %s318_s3, 4  ;;  %s189_s4 = sshll.u32 %s388_s5, 4  ;;  %s188_s10 = int_to_ptr.vmem [resolvable:$true] %s187_s10  ;;  %s190_s4 = int_to_ptr.hbm [resolvable:$true] %s189_s4 }
  0x11   :  { %93 = vmatpush.bf16.msra.mxu0 %v212_v2 }
  0x14   :  { %211 = vmatmul.msk.bf16.vlgmr.msra.gmra.mxu0 %vm82_vm1, %v65_v5  ;;  %v61_v6 = vld [vmem:[#allocation2] sm:$0xff] }
  0x15   :  { %v62_v9 = vld [vmem:[#allocation2 + $0x8] sm:$0xff]  ;;  %v227_v20 = vpop.eup %226 }
  0x16   :  { %v123_v21 = vmul.f32 64.0, %v227_v20  ;;  %vm127_vm2 = vweird.f32 %v227_v20 }
  0x18   :  { %v124_v22 = vsub.f32 1.0, %v123_v21 }
  0x1a   :  { %v125_v23 = vmul.f32 %v227_v20, %v124_v22 }
  0x1c   :  { %v126_v24 = vadd.f32 %v227_v20, %v125_v23 }
  0x1e   :  { %v128_v25 = vsel %vm127_vm2, %v227_v20, %v126_v24 }
  0x91   :  { %v95_v7 = vpop.f32.mrf.mxu0 }
  0x92   :  { %v100_v8 = vadd.f32 %v95_v7, %v61_v6 }
  0x94   :  { %103 = vst.msk [vmem:[#allocation2] sm:$0xff] %vm58_vm0, %v100_v8 }
  0x99   :  { %v97_v11 = vpop.f32.mrf.mxu0 }
  0x9a   :  { %v101_v12 = vadd.f32 %v97_v11, %v62_v9 }
  0x9b   :  { %v108_v13 = vld [vmem:[#allocation2] sm:$0xff] }
  0x9c   :  { %104 = vst.msk [vmem:[#allocation2 + $0x8] sm:$0xff] %vm58_vm0, %v101_v12  ;;  %v114_v14 = vadd.f32 %v223_v10, %v108_v13 }
  0x9e   :  { %v116_v15 = vsel %vm58_vm0, %v114_v14, 0.0 }
  0x9f   :  { %117 = vadd.xlane.f32.xlu0 %v116_v15 }
  0xa3   :  { %v109_v16 = vld [vmem:[#allocation2 + $0x8] sm:$0xff] }
  0xa4   :  { %v115_v17 = vadd.f32 %v223_v10, %v109_v16 }
  0xa6   :  { %v119_v18 = vsel %vm58_vm0, %v115_v17, 0.0 }
  0xa7   :  { %120 = vadd.xlane.f32.xlu0 %v119_v18 }
 0x112   :  { %v118_v26 = vpop.xlane.xlu0 %117 }
 0x113   :  { %v129_v27 = vmul.f32 %v128_v25, %v118_v26 }
 0x115   :  { %v131_v28 = vsub.f32 %v114_v14, %v129_v27 }
 0x117   :  { %v133_v29 = vmul.f32 %v131_v28, %v131_v28 }
 0x119   :  { %v135_v30 = vsel %vm58_vm0, %v133_v29, 0.0 }
 0x11a   :  { %136 = vadd.xlane.f32.xlu1 %v135_v30  ;;  %v121_v31 = vpop.xlane.xlu0 %120 }
 0x11b   :  { %v130_v32 = vmul.f32 %v128_v25, %v121_v31 }
 0x11d   :  { %v132_v33 = vsub.f32 %v115_v17, %v130_v32 }
 0x11f   :  { %v134_v34 = vmul.f32 %v132_v33, %v132_v33 }
 0x121   :  { %v138_v35 = vsel %vm58_vm0, %v134_v34, 0.0 }
 0x122   :  { %139 = vadd.xlane.f32.xlu1 %v138_v35 }
 0x18d   :  { %v137_v36 = vpop.xlane.xlu1 %136 }
 0x18e   :  { %v141_v37 = vmul.f32 %v137_v36, %v128_v25 }
 0x190   :  { %v143_v38 = vadd.f32 1e-05, %v141_v37 }
 0x192   :  { %228 = vrsqrt.f32 %v143_v38  ;;  %vm151_vm4 = vweird.f32 %v143_v38 }
 0x195   :  { %v140_v39 = vpop.xlane.xlu1 %139 }
 0x196   :  { %v142_v40 = vmul.f32 %v140_v39, %v128_v25 }
 0x198   :  { %v229_v41 = vpop.eup %228  ;;  %v144_v42 = vadd.f32 1e-05, %v142_v40 }
 0x199   :  { %v146_v43 = vmul.f32 %v229_v41, %v143_v38  ;;  %vm152_vm3 = vweird.f32 %v229_v41 }
 0x19a   :  { %230 = vrsqrt.f32 %v144_v42  ;;  %vm153_vm5 = vmor %vm151_vm4, %vm152_vm3  ;;  %vm161_vm7 = vweird.f32 %v144_v42 }
 0x19b   :  { %v147_v44 = vmul.f32 %v229_v41, %v146_v43 }
 0x19d   :  { %v148_v45 = vmul.f32 0.5, %v147_v44 }
 0x19f   :  { %v149_v46 = vsub.f32 1.5, %v148_v45 }
 0x1a0   :  { %v231_v47 = vpop.eup %230 }
 0x1a1   :  { %v150_v48 = vmul.f32 %v229_v41, %v149_v46  ;;  %v156_v49 = vmul.f32 %v231_v47, %v144_v42  ;;  %vm162_vm6 = vweird.f32 %v231_v47 }
 0x1a2   :  { %vm163_vm8 = vmor %vm161_vm7, %vm162_vm6 }
 0x1a3   :  { %v154_v51 = vsel %vm153_vm5, %v229_v41, %v150_v48  ;;  %v157_v52 = vmul.f32 %v231_v47, %v156_v49 }
 0x1a4   :  { %v165_v53 = vmul.f32 %v154_v51, %v131_v28 }
 0x1a5   :  { %v158_v55 = vmul.f32 0.5, %v157_v52 }
 0x1a6   :  { %v171_v56 = vmul.f32 %v224_v50, %v165_v53 }
 0x1a7   :  { %v159_v57 = vsub.f32 1.5, %v158_v55 }
 0x1a8   :  { %v177_v58 = vadd.f32 %v225_v54, %v171_v56 }
 0x1a9   :  { %v160_v59 = vmul.f32 %v231_v47, %v159_v57 }
 0x1aa   :  { %v179_v60 = vmax.f32 %v177_v58, 0.0 }
 0x1ab   :  { %v164_v61 = vsel %vm163_vm8, %v231_v47, %v160_v59 }
 0x1ac   :  { %v166_v62 = vmul.f32 %v164_v61, %v132_v33  ;;  %181 = vst.msk [vmem:[#allocation8] sm:$0xff] %vm58_vm0, %v179_v60 }
 0x1ae   :  { %v172_v63 = vmul.f32 %v224_v50, %v166_v62 }
 0x1b0   :  { %v178_v0 = vadd.f32 %v225_v54, %v172_v63 }
 0x1b2   :  { %v180_v1 = vmax.f32 %v178_v0, 0.0 }
 0x1b4   :  { %182 = vst.msk [vmem:[#allocation8 + $0x8] sm:$0xff] %vm58_vm0, %v180_v1 }
 0x1b5   :  { %195 = dma.vmem_to_hbm [thread:$0]  %s188_s10, 256, %s190_s4, [#allocation5], %s311_s26, %s311_s26, %s312_s27  }
 0x1b6   :  { %308 = dma.done.wait [#allocation5], 256  }
 0x1b7   :  { %309 = vsyncadd [#allocation5], 4294967040 }
 0x1b8   :  { %200 = vsyncpa [#allocation4], 1 }
 0x1b9   :  { %201 = vsyncpa [#allocation7], 1 }
 0x1ba   :  { %202 = vsyncpa [#allocation5], 1 }

</bundles_post_ra>
